<compile_context>
chip_gen: v6e
topology: v6e:2x2x1
jax: 0.10.0
libtpu: 0.0.40
codegen_flags: <defaults>
</compile_context>

<pallas_src>
import jax
import jax.numpy as jnp
from jax.experimental import pallas as pl
from jax.experimental.pallas import tpu as pltpu


def _round_up(x, m):
    return (x + m - 1) // m * m


def _fold_bn(gamma, beta, mean, var, eps=1e-5):
    # TODO(synk): BatchNorm is folded with running (eval-mode) statistics;
    # PyTorch BatchNorm2d in training mode would use per-batch statistics.
    scale = gamma / jnp.sqrt(var + eps)
    shift = beta - mean * scale
    return scale.astype(jnp.float32), shift.astype(jnp.float32)


def _kfold_weight(w_oihw, cout_pad, cin_pad):
    """OIHW (Cout, Cin, 3, 3) -> (cout_pad, 9*cin_pad) bf16.
    K rows ordered tap-major ((kh, kw)), channel-minor, matching the in-kernel
    im2col construction. Padded rows/cols are zero."""
    co, ci, kh, kw = w_oihw.shape
    w = jnp.pad(w_oihw, ((0, cout_pad - co), (0, cin_pad - ci), (0, 0), (0, 0)))
    w = jnp.transpose(w, (0, 2, 3, 1)).reshape(cout_pad, kh * kw * cin_pad)
    return w.astype(jnp.bfloat16)


def _make_basicblock_kernel(wo, hw, c, c_p, identity_sc, stride1_input):
    """Fully fused BasicBlock for one image; channels on sublanes, hw on lanes."""

    def taps(buf, left_edge, right_edge):
        # buf: (nch, (rows+2)*wo + 2) -- activation zero-padded by one row at
        # the top/bottom, flattened row-major, with a one-element guard at each
        # end. Every 3x3 tap is then a contiguous lane-shifted window of length
        # hw; taps reaching across the (unpadded) W boundary wrap into the
        # neighbouring row and are masked back to zero.  Stays in the buffer's
        # dtype (bf16) -- no f32 round-trip.
        parts = []
        for kh in range(3):
            for kw in range(3):
                start = kh * wo + kw
                t = buf[:, start:start + hw]
                if kw == 0:
                    t = jnp.where(left_edge, 0.0, t)
                elif kw == 2:
                    t = jnp.where(right_edge, 0.0, t)
                parts.append(t)
        # K-folded im2col matrix (9*nch, hw); nch is a multiple of 16 so this
        # bf16 sublane concatenation is tile-aligned.
        return jnp.concatenate(parts, axis=0)

    def kernel(x_ref, w1_ref, w2_ref, s1_ref, sh1_ref, s2_ref, sh2_ref, *rest):
        if identity_sc:
            o_ref, y1p_ref = rest
        else:
            ssc_ref, shsc_ref, o_ref, y1p_ref = rest

        col = jax.lax.broadcasted_iota(jnp.int32, (1, hw), 1) % wo
        left_edge = col == 0
        right_edge = col == wo - 1

        # ---- conv1 / shortcut input taps: one (9*Cin_p, hw) bf16 matrix -----
        if stride1_input:
            xflat = x_ref[0]                                  # (cin_p, lx) bf16
            xcol_bf = taps(xflat, left_edge, right_edge)
        else:
            xcol_bf = x_ref[0]   # pre-built K-folded taps (stride > 1 fallback)

        # ---- conv1 (+ fused shortcut conv): ONE MXU matmul, K = 9*Cin_p -----
        # w1_ref stacks [conv1 weight (c_p rows); shortcut weight (c rows)] so
        # both convs share a single RHS push and fill more MXU rows.
        a = jnp.dot(w1_ref[...], xcol_bf, preferred_element_type=jnp.float32)
        y1 = jnp.maximum(a[:c_p] * s1_ref[...] + sh1_ref[...], 0.0)  # (c_p, hw)

        # ---- keep conv1's activation in VMEM as bf16 (row-padded + guards) --
        # Only the pad rows / guard elements are zeroed (tiny store, safe even
        # when the grid is sharded across cores); the interior is overwritten
        # every step.
        y1p_ref[:, :wo + 1] = jnp.zeros((c_p, wo + 1), jnp.bfloat16)
        y1p_ref[:, wo + 1 + hw:] = jnp.zeros((c_p, wo + 1), jnp.bfloat16)
        y1p_ref[:, wo + 1:wo + 1 + hw] = y1.astype(jnp.bfloat16)

        # ---- conv2 + BN2: single MXU matmul, K = 9*Cp ------------------------
        ycol_bf = taps(y1p_ref[...], left_edge, right_edge)
        out = jnp.dot(w2_ref[...], ycol_bf, preferred_element_type=jnp.float32)
        out = out * s2_ref[...] + sh2_ref[...]

        # ---- shortcut --------------------------------------------------------
        if identity_sc:
            # Residual = interior window of the already-loaded bf16 flat buffer
            # (no second HBM read of x).
            out = out + xflat[:c, wo + 1:wo + 1 + hw].astype(jnp.float32)
        else:
            out = out + (a[c_p:] * ssc_ref[...] + shsc_ref[...])

        # ---- final ReLU; lane-dense store (hw = Ho*Wo is the lane axis) ------
        o_ref[0] = jnp.maximum(out, 0.0)

    return kernel


def basicblock_forward(x, w1, bn1, w2, bn2, shortcut=None, stride=1):
    """Fused ResNet BasicBlock forward.

    x : (N, Cin, H, W) float32, NCHW (PyTorch layout).
    w1: (C, Cin, 3, 3), w2: (C, C, 3, 3) OIHW, bias-free.
    bn1, bn2: (gamma, beta, running_mean, running_var), each (C,).
    shortcut: None for identity, else (w_sc (C, Cin, 3, 3), b_sc (C,), bn_sc).
    Returns (N, C, Ho, Wo) float32.
    """
    n, cin, h, w = x.shape
    c = w1.shape[0]
    ho = (h + 2 - 3) // stride + 1
    wo = (w + 2 - 3) // stride + 1
    hw = ho * wo

    identity_sc = shortcut is None
    stride1_input = stride == 1
    assert (not identity_sc) or (stride == 1 and cin == c)

    # Pad channel counts to the bf16 sublane tile (16) so the in-kernel bf16
    # concatenation along the K axis is tile-aligned (padded channels are zero).
    cin_p = _round_up(cin, 16)
    c_p = _round_up(c, 16)

    s1, sh1 = _fold_bn(*bn1)
    s2, sh2 = _fold_bn(*bn2)
    s1 = jnp.pad(s1, (0, c_p - c)).reshape(c_p, 1)
    sh1 = jnp.pad(sh1, (0, c_p - c)).reshape(c_p, 1)

    w1k = _kfold_weight(w1, c_p, cin_p)   # (c_p, 9*cin_p)
    w2k = _kfold_weight(w2, c, c_p)       # (c,   9*c_p)

    if not identity_sc:
        w_sc, b_sc, bn_sc = shortcut
        ssc, shsc = _fold_bn(*bn_sc)
        shsc = ssc * b_sc + shsc          # fold the shortcut conv bias into BN
        # Stack conv1 + shortcut weights -> one matmul in the kernel.
        w1k = jnp.concatenate([w1k, _kfold_weight(w_sc, c, cin_p)], axis=0)

    x_cp = jnp.pad(x, ((0, 0), (0, cin_p - cin), (0, 0), (0, 0)))

    args, in_specs = [], []
    if stride1_input:
        # Pad H by one row top/bottom, flatten rows, add a one-element guard at
        # each end: the nine 3x3 taps become contiguous lane shifts of this one
        # bf16 buffer (no 9x im2col materialization in HBM), and the identity
        # residual is just its interior window.
        lx = (h + 2) * w + 2
        xp = jnp.pad(x_cp, ((0, 0), (0, 0), (1, 1), (0, 0)))
        xflat = jnp.pad(xp.reshape(n, cin_p, (h + 2) * w),
                        ((0, 0), (0, 0), (1, 1)))
        args.append(xflat.astype(jnp.bfloat16))
        in_specs.append(pl.BlockSpec((1, cin_p, lx), lambda i: (i, 0, 0)))
    else:
        # TODO(synk): for stride > 1 the flat-shift trick does not apply; the
        # K-folded tap matrix for the block input is built with XLA strided
        # slices (~9x input bytes). In-kernel strided slices (pl.ds with
        # stride) would bring input traffic back to ~1x.
        xp = jnp.pad(x_cp, ((0, 0), (0, 0), (1, 1), (1, 1)))
        tap_list = [
            xp[:, :, kh:kh + (ho - 1) * stride + 1:stride,
                  kw:kw + (wo - 1) * stride + 1:stride].reshape(n, cin_p, hw)
            for kh in range(3) for kw in range(3)]
        xcols = jnp.concatenate(tap_list, axis=1).astype(jnp.bfloat16)
        args.append(xcols)
        in_specs.append(pl.BlockSpec((1, 9 * cin_p, hw), lambda i: (i, 0, 0)))

    def bcast_spec(shape):
        nd = len(shape)
        return pl.BlockSpec(shape, lambda i: (0,) * nd)

    args += [w1k, w2k, s1, sh1, s2.reshape(c, 1), sh2.reshape(c, 1)]
    in_specs += [bcast_spec(w1k.shape), bcast_spec((c, 9 * c_p)),
                 bcast_spec((c_p, 1)), bcast_spec((c_p, 1)),
                 bcast_spec((c, 1)), bcast_spec((c, 1))]

    if not identity_sc:
        args += [ssc.reshape(c, 1), shsc.reshape(c, 1)]
        in_specs += [bcast_spec((c, 1)), bcast_spec((c, 1))]

    ly = (ho + 2) * wo + 2
    kernel = _make_basicblock_kernel(wo, hw, c, c_p, identity_sc, stride1_input)

    out = pl.pallas_call(
        kernel,
        out_shape=jax.ShapeDtypeStruct((n, c, hw), jnp.float32),
        grid=(n,),
        in_specs=in_specs,
        out_specs=pl.BlockSpec((1, c, hw), lambda i: (i, 0, 0)),
        scratch_shapes=[pltpu.VMEM((c_p, ly), jnp.bfloat16)],
        compiler_params=pltpu.CompilerParams(
            dimension_semantics=("parallel",)),
    )(*args)
    return out.reshape(n, c, ho, wo)


if __name__ == "__main__":
    key = jax.random.PRNGKey(0)

    def bn_params(k, planes):
        k1, k2, k3, k4 = jax.random.split(k, 4)
        return (1.0 + 0.1 * jax.random.normal(k1, (planes,), jnp.float32),
                0.1 * jax.random.normal(k2, (planes,), jnp.float32),
                0.1 * jax.random.normal(k3, (planes,), jnp.float32),
                1.0 + 0.1 * jax.random.uniform(k4, (planes,), jnp.float32))

    def ref_conv(xi, wi, s):
        return jax.lax.conv_general_dilated(
            xi.astype(jnp.bfloat16), wi.astype(jnp.bfloat16),
            window_strides=(s, s), padding=((1, 1), (1, 1)),
            dimension_numbers=("NCHW", "OIHW", "NCHW"),
            preferred_element_type=jnp.float32)

    def ref_bn(y, bn):
        sc, sh = _fold_bn(*bn)
        return y * sc.reshape(1, -1, 1, 1) + sh.reshape(1, -1, 1, 1)

    def run_case(k, in_planes, planes, stride, N=2, H=16, W=16):
        keys = jax.random.split(k, 8)
        x = jax.random.normal(keys[0], (N, in_planes, H, W), jnp.float32)
        # Conv weights in PyTorch OIHW layout; conv1/conv2 are bias-free, the
        # shortcut conv keeps PyTorch's default bias=True (as in the module).
        w1 = 0.1 * jax.random.normal(keys[1], (planes, in_planes, 3, 3),
                                     jnp.float32)
        w2 = 0.1 * jax.random.normal(keys[2], (planes, planes, 3, 3),
                                     jnp.float32)
        bn1, bn2 = bn_params(keys[5], planes), bn_params(keys[6], planes)

        identity = (stride == 1 and in_planes == planes)
        if identity:
            shortcut = None
        else:
            w_sc = 0.1 * jax.random.normal(keys[3], (planes, in_planes, 3, 3),
                                           jnp.float32)
            b_sc = 0.1 * jax.random.normal(keys[4], (planes,), jnp.float32)
            bn_sc = bn_params(keys[7], planes)
            shortcut = (w_sc, b_sc, bn_sc)

        fwd = jax.jit(lambda xx: basicblock_forward(
            xx, w1, bn1, w2, bn2, shortcut=shortcut, stride=stride))
        out = jax.block_until_ready(fwd(x))

        # ---- pure-JAX reference (same bf16 matmul operands, f32 accum) ------
        y1 = jax.nn.relu(ref_bn(ref_conv(x, w1, stride), bn1))
        y2 = ref_bn(ref_conv(y1, w2, 1), bn2)
        if identity:
            # the kernel reuses the bf16 input buffer as the residual
            sc_ref = x.astype(jnp.bfloat16).astype(jnp.float32)
        else:
            w_sc, b_sc, bn_sc = shortcut
            sc_ref = ref_bn(ref_conv(x, w_sc, stride)
                            + b_sc.reshape(1, -1, 1, 1), bn_sc)
        ref = jax.nn.relu(y2 + sc_ref)

        assert out.shape == ref.shape, (out.shape, ref.shape)
        max_err = float(jnp.max(jnp.abs(out - ref)))
        assert jnp.allclose(out, ref, atol=1e-2, rtol=1e-2), \
            (in_planes, planes, stride, max_err)

    k0, k1, k2 = jax.random.split(key, 3)
    run_case(k0, in_planes=4, planes=8, stride=1)   # conv+BN shortcut
    run_case(k1, in_planes=8, planes=8, stride=1)   # identity shortcut
    run_case(k2, in_planes=4, planes=8, stride=2)   # downsample, conv shortcut
    print("KERNEL_OK")
</pallas_src>

<mosaic_0001>
module attributes {stable_mosaic.version = 11 : i64} {
  func.func @kernel(%arg0: i32, %arg1: memref<1x16x290xbf16, #tpu.memory_space<vmem>>, %arg2: memref<24x144xbf16, #tpu.memory_space<vmem>>, %arg3: memref<8x144xbf16, #tpu.memory_space<vmem>>, %arg4: memref<16x1xf32, #tpu.memory_space<vmem>>, %arg5: memref<16x1xf32, #tpu.memory_space<vmem>>, %arg6: memref<8x1xf32, #tpu.memory_space<vmem>>, %arg7: memref<8x1xf32, #tpu.memory_space<vmem>>, %arg8: memref<8x1xf32, #tpu.memory_space<vmem>>, %arg9: memref<8x1xf32, #tpu.memory_space<vmem>>, %arg10: memref<1x8x256xf32, #tpu.memory_space<vmem>>, %arg11: memref<16x290xbf16, #tpu.memory_space<vmem>>) attributes {dimension_semantics = [#tpu.dimension_semantics<parallel>], iteration_bounds = array<i64: 2>, scalar_prefetch = 0 : i64, scratch_operands = 1 : i64, tpu.core_type = #tpu.core_type<tc>, window_params = [{transform_indices = @transform_0, window_bounds = array<i64: 1, 16, 290>}, {pipeline_mode = #tpu.pipeline_mode<synchronous>, transform_indices = @transform_1, window_bounds = array<i64: 24, 144>}, {pipeline_mode = #tpu.pipeline_mode<synchronous>, transform_indices = @transform_2, window_bounds = array<i64: 8, 144>}, {pipeline_mode = #tpu.pipeline_mode<synchronous>, transform_indices = @transform_3, window_bounds = array<i64: 16, 1>}, {pipeline_mode = #tpu.pipeline_mode<synchronous>, transform_indices = @transform_4, window_bounds = array<i64: 16, 1>}, {pipeline_mode = #tpu.pipeline_mode<synchronous>, transform_indices = @transform_5, window_bounds = array<i64: 8, 1>}, {pipeline_mode = #tpu.pipeline_mode<synchronous>, transform_indices = @transform_6, window_bounds = array<i64: 8, 1>}, {pipeline_mode = #tpu.pipeline_mode<synchronous>, transform_indices = @transform_7, window_bounds = array<i64: 8, 1>}, {pipeline_mode = #tpu.pipeline_mode<synchronous>, transform_indices = @transform_8, window_bounds = array<i64: 8, 1>}, {transform_indices = @transform_9, window_bounds = array<i64: 1, 8, 256>}]} {
    %0 = tpu.iota {dimensions = array<i32: 1>} : vector<1x256xi32>
    %c16_i32 = arith.constant 16 : i32
    %c0_i32 = arith.constant 0 : i32
    %1 = arith.cmpi eq, %c16_i32, %c0_i32 : i32
    %c1_i32 = arith.constant 1 : i32
    %2 = arith.select %1, %c1_i32, %c16_i32 : i32
    %3 = vector.broadcast %2 : i32 to vector<1x256xi32>
    %4 = arith.remsi %0, %3 : vector<1x256xi32>
    %c0_i32_0 = arith.constant 0 : i32
    %5 = vector.broadcast %c0_i32_0 : i32 to vector<1x256xi32>
    %6 = arith.cmpi ne, %4, %5 : vector<1x256xi32>
    %c0_i32_1 = arith.constant 0 : i32
    %7 = vector.broadcast %c0_i32_1 : i32 to vector<1x256xi32>
    %8 = arith.cmpi slt, %4, %7 : vector<1x256xi32>
    %c0_i32_2 = arith.constant 0 : i32
    %9 = arith.cmpi slt, %2, %c0_i32_2 : i32
    %10 = vector.broadcast %9 : i1 to vector<1x256xi1>
    %11 = vector.broadcast %10 : vector<1x256xi1> to vector<1x256xi1>
    %12 = arith.xori %8, %11 : vector<1x256xi1>
    %13 = arith.andi %12, %6 : vector<1x256xi1>
    %14 = vector.broadcast %2 : i32 to vector<1x256xi32>
    %15 = arith.addi %4, %14 : vector<1x256xi32>
    %16 = arith.select %13, %15, %4 : vector<1x256xi1>, vector<1x256xi32>
    %c0_i32_3 = arith.constant 0 : i32
    %17 = vector.broadcast %c0_i32_3 : i32 to vector<1x256xi32>
    %18 = arith.cmpi eq, %16, %17 : vector<1x256xi32>
    %c15_i32 = arith.constant 15 : i32
    %19 = vector.broadcast %c15_i32 : i32 to vector<1x256xi32>
    %20 = arith.cmpi eq, %16, %19 : vector<1x256xi32>
    %c0 = arith.constant 0 : index
    %c0_4 = arith.constant 0 : index
    %c0_5 = arith.constant 0 : index
    %21 = vector.load %arg1[%c0, %c0_4, %c0_5] : memref<1x16x290xbf16, #tpu.memory_space<vmem>>, vector<1x16x290xbf16>
    %22 = vector.shape_cast %21 : vector<1x16x290xbf16> to vector<16x290xbf16>
    %23 = vector.extract_strided_slice %22 {offsets = [0, 0], sizes = [16, 256], strides = [1, 1]} : vector<16x290xbf16> to vector<16x256xbf16>
    %cst = arith.constant 0.000000e+00 : f32
    %24 = arith.truncf %cst : f32 to bf16
    %25 = vector.shape_cast %18 : vector<1x256xi1> to vector<1x256xi1>
    %26 = vector.broadcast %25 : vector<1x256xi1> to vector<16x256xi1>
    %27 = vector.broadcast %24 : bf16 to vector<16x256xbf16>
    %28 = arith.select %26, %27, %23 : vector<16x256xi1>, vector<16x256xbf16>
    %29 = vector.extract_strided_slice %22 {offsets = [0, 1], sizes = [16, 256], strides = [1, 1]} : vector<16x290xbf16> to vector<16x256xbf16>
    %30 = vector.extract_strided_slice %22 {offsets = [0, 2], sizes = [16, 256], strides = [1, 1]} : vector<16x290xbf16> to vector<16x256xbf16>
    %cst_6 = arith.constant 0.000000e+00 : f32
    %31 = arith.truncf %cst_6 : f32 to bf16
    %32 = vector.shape_cast %20 : vector<1x256xi1> to vector<1x256xi1>
    %33 = vector.broadcast %32 : vector<1x256xi1> to vector<16x256xi1>
    %34 = vector.broadcast %31 : bf16 to vector<16x256xbf16>
    %35 = arith.select %33, %34, %30 : vector<16x256xi1>, vector<16x256xbf16>
    %36 = vector.extract_strided_slice %22 {offsets = [0, 16], sizes = [16, 256], strides = [1, 1]} : vector<16x290xbf16> to vector<16x256xbf16>
    %cst_7 = arith.constant 0.000000e+00 : f32
    %37 = arith.truncf %cst_7 : f32 to bf16
    %38 = vector.shape_cast %18 : vector<1x256xi1> to vector<1x256xi1>
    %39 = vector.broadcast %38 : vector<1x256xi1> to vector<16x256xi1>
    %40 = vector.broadcast %37 : bf16 to vector<16x256xbf16>
    %41 = arith.select %39, %40, %36 : vector<16x256xi1>, vector<16x256xbf16>
    %42 = vector.extract_strided_slice %22 {offsets = [0, 17], sizes = [16, 256], strides = [1, 1]} : vector<16x290xbf16> to vector<16x256xbf16>
    %43 = vector.extract_strided_slice %22 {offsets = [0, 18], sizes = [16, 256], strides = [1, 1]} : vector<16x290xbf16> to vector<16x256xbf16>
    %cst_8 = arith.constant 0.000000e+00 : f32
    %44 = arith.truncf %cst_8 : f32 to bf16
    %45 = vector.shape_cast %20 : vector<1x256xi1> to vector<1x256xi1>
    %46 = vector.broadcast %45 : vector<1x256xi1> to vector<16x256xi1>
    %47 = vector.broadcast %44 : bf16 to vector<16x256xbf16>
    %48 = arith.select %46, %47, %43 : vector<16x256xi1>, vector<16x256xbf16>
    %49 = vector.extract_strided_slice %22 {offsets = [0, 32], sizes = [16, 256], strides = [1, 1]} : vector<16x290xbf16> to vector<16x256xbf16>
    %cst_9 = arith.constant 0.000000e+00 : f32
    %50 = arith.truncf %cst_9 : f32 to bf16
    %51 = vector.shape_cast %18 : vector<1x256xi1> to vector<1x256xi1>
    %52 = vector.broadcast %51 : vector<1x256xi1> to vector<16x256xi1>
    %53 = vector.broadcast %50 : bf16 to vector<16x256xbf16>
    %54 = arith.select %52, %53, %49 : vector<16x256xi1>, vector<16x256xbf16>
    %55 = vector.extract_strided_slice %22 {offsets = [0, 33], sizes = [16, 256], strides = [1, 1]} : vector<16x290xbf16> to vector<16x256xbf16>
    %56 = vector.extract_strided_slice %22 {offsets = [0, 34], sizes = [16, 256], strides = [1, 1]} : vector<16x290xbf16> to vector<16x256xbf16>
    %cst_10 = arith.constant 0.000000e+00 : f32
    %57 = arith.truncf %cst_10 : f32 to bf16
    %58 = vector.shape_cast %20 : vector<1x256xi1> to vector<1x256xi1>
    %59 = vector.broadcast %58 : vector<1x256xi1> to vector<16x256xi1>
    %60 = vector.broadcast %57 : bf16 to vector<16x256xbf16>
    %61 = arith.select %59, %60, %56 : vector<16x256xi1>, vector<16x256xbf16>
    %62 = tpu.concatenate %28, %29, %35, %41, %42, %48, %54, %55, %61 in 0 : vector<16x256xbf16>, vector<16x256xbf16>, vector<16x256xbf16>, vector<16x256xbf16>, vector<16x256xbf16>, vector<16x256xbf16>, vector<16x256xbf16>, vector<16x256xbf16>, vector<16x256xbf16> -> vector<144x256xbf16>
    %c0_11 = arith.constant 0 : index
    %c0_12 = arith.constant 0 : index
    %63 = vector.load %arg2[%c0_11, %c0_12] : memref<24x144xbf16, #tpu.memory_space<vmem>>, vector<24x144xbf16>
    %cst_13 = arith.constant dense<0.000000e+00> : vector<24x256xf32>
    %64 = tpu.matmul %63, %62, %cst_13 {dimension_numbers = #tpu.dot_dimension_numbers<[1], [0], [0], [1], [0, 0, 1, 1], [], []>} : vector<24x144xbf16>, vector<144x256xbf16>, vector<24x256xf32> -> vector<24x256xf32>
    %65 = vector.extract_strided_slice %64 {offsets = [0, 0], sizes = [16, 256], strides = [1, 1]} : vector<24x256xf32> to vector<16x256xf32>
    %c0_14 = arith.constant 0 : index
    %c0_15 = arith.constant 0 : index
    %66 = vector.load %arg4[%c0_14, %c0_15] : memref<16x1xf32, #tpu.memory_space<vmem>>, vector<16x1xf32>
    %67 = vector.broadcast %66 : vector<16x1xf32> to vector<16x256xf32>
    %68 = arith.mulf %65, %67 : vector<16x256xf32>
    %c0_16 = arith.constant 0 : index
    %c0_17 = arith.constant 0 : index
    %69 = vector.load %arg5[%c0_16, %c0_17] : memref<16x1xf32, #tpu.memory_space<vmem>>, vector<16x1xf32>
    %70 = vector.broadcast %69 : vector<16x1xf32> to vector<16x256xf32>
    %71 = arith.addf %68, %70 : vector<16x256xf32>
    %cst_18 = arith.constant 0.000000e+00 : f32
    %72 = vector.broadcast %cst_18 : f32 to vector<16x256xf32>
    %73 = arith.maximumf %71, %72 : vector<16x256xf32>
    %cst_19 = arith.constant 0.000000e+00 : bf16
    %74 = vector.broadcast %cst_19 : bf16 to vector<16x17xbf16>
    %c0_20 = arith.constant 0 : index
    %c0_21 = arith.constant 0 : index
    %75 = vector.load %arg11[%c0_20, %c0_21] : memref<16x290xbf16, #tpu.memory_space<vmem>>, vector<16x17xbf16>
    tpu.vector_store %arg11[%c0_20, %c0_21], %74 {strides = array<i32>} : memref<16x290xbf16, #tpu.memory_space<vmem>>, vector<16x17xbf16>,
    %cst_22 = arith.constant 0.000000e+00 : bf16
    %76 = vector.broadcast %cst_22 : bf16 to vector<16x17xbf16>
    %c0_23 = arith.constant 0 : index
    %c273 = arith.constant 273 : index
    %77 = vector.load %arg11[%c0_23, %c273] : memref<16x290xbf16, #tpu.memory_space<vmem>>, vector<16x17xbf16>
    tpu.vector_store %arg11[%c0_23, %c273], %76 {strides = array<i32>} : memref<16x290xbf16, #tpu.memory_space<vmem>>, vector<16x17xbf16>,
    %78 = arith.truncf %73 : vector<16x256xf32> to vector<16x256xbf16>
    %c0_24 = arith.constant 0 : index
    %c17 = arith.constant 17 : index
    %79 = vector.load %arg11[%c0_24, %c17] : memref<16x290xbf16, #tpu.memory_space<vmem>>, vector<16x256xbf16>
    tpu.vector_store %arg11[%c0_24, %c17], %78 {strides = array<i32>} : memref<16x290xbf16, #tpu.memory_space<vmem>>, vector<16x256xbf16>,
    %c0_25 = arith.constant 0 : index
    %c0_26 = arith.constant 0 : index
    %80 = vector.load %arg11[%c0_25, %c0_26] : memref<16x290xbf16, #tpu.memory_space<vmem>>, vector<16x290xbf16>
    %81 = vector.extract_strided_slice %80 {offsets = [0, 0], sizes = [16, 256], strides = [1, 1]} : vector<16x290xbf16> to vector<16x256xbf16>
    %cst_27 = arith.constant 0.000000e+00 : f32
    %82 = arith.truncf %cst_27 : f32 to bf16
    %83 = vector.shape_cast %18 : vector<1x256xi1> to vector<1x256xi1>
    %84 = vector.broadcast %83 : vector<1x256xi1> to vector<16x256xi1>
    %85 = vector.broadcast %82 : bf16 to vector<16x256xbf16>
    %86 = arith.select %84, %85, %81 : vector<16x256xi1>, vector<16x256xbf16>
    %87 = vector.extract_strided_slice %80 {offsets = [0, 1], sizes = [16, 256], strides = [1, 1]} : vector<16x290xbf16> to vector<16x256xbf16>
    %88 = vector.extract_strided_slice %80 {offsets = [0, 2], sizes = [16, 256], strides = [1, 1]} : vector<16x290xbf16> to vector<16x256xbf16>
    %cst_28 = arith.constant 0.000000e+00 : f32
    %89 = arith.truncf %cst_28 : f32 to bf16
    %90 = vector.shape_cast %20 : vector<1x256xi1> to vector<1x256xi1>
    %91 = vector.broadcast %90 : vector<1x256xi1> to vector<16x256xi1>
    %92 = vector.broadcast %89 : bf16 to vector<16x256xbf16>
    %93 = arith.select %91, %92, %88 : vector<16x256xi1>, vector<16x256xbf16>
    %94 = vector.extract_strided_slice %80 {offsets = [0, 16], sizes = [16, 256], strides = [1, 1]} : vector<16x290xbf16> to vector<16x256xbf16>
    %cst_29 = arith.constant 0.000000e+00 : f32
    %95 = arith.truncf %cst_29 : f32 to bf16
    %96 = vector.shape_cast %18 : vector<1x256xi1> to vector<1x256xi1>
    %97 = vector.broadcast %96 : vector<1x256xi1> to vector<16x256xi1>
    %98 = vector.broadcast %95 : bf16 to vector<16x256xbf16>
    %99 = arith.select %97, %98, %94 : vector<16x256xi1>, vector<16x256xbf16>
    %100 = vector.extract_strided_slice %80 {offsets = [0, 17], sizes = [16, 256], strides = [1, 1]} : vector<16x290xbf16> to vector<16x256xbf16>
    %101 = vector.extract_strided_slice %80 {offsets = [0, 18], sizes = [16, 256], strides = [1, 1]} : vector<16x290xbf16> to vector<16x256xbf16>
    %cst_30 = arith.constant 0.000000e+00 : f32
    %102 = arith.truncf %cst_30 : f32 to bf16
    %103 = vector.shape_cast %20 : vector<1x256xi1> to vector<1x256xi1>
    %104 = vector.broadcast %103 : vector<1x256xi1> to vector<16x256xi1>
    %105 = vector.broadcast %102 : bf16 to vector<16x256xbf16>
    %106 = arith.select %104, %105, %101 : vector<16x256xi1>, vector<16x256xbf16>
    %107 = vector.extract_strided_slice %80 {offsets = [0, 32], sizes = [16, 256], strides = [1, 1]} : vector<16x290xbf16> to vector<16x256xbf16>
    %cst_31 = arith.constant 0.000000e+00 : f32
    %108 = arith.truncf %cst_31 : f32 to bf16
    %109 = vector.shape_cast %18 : vector<1x256xi1> to vector<1x256xi1>
    %110 = vector.broadcast %109 : vector<1x256xi1> to vector<16x256xi1>
    %111 = vector.broadcast %108 : bf16 to vector<16x256xbf16>
    %112 = arith.select %110, %111, %107 : vector<16x256xi1>, vector<16x256xbf16>
    %113 = vector.extract_strided_slice %80 {offsets = [0, 33], sizes = [16, 256], strides = [1, 1]} : vector<16x290xbf16> to vector<16x256xbf16>
    %114 = vector.extract_strided_slice %80 {offsets = [0, 34], sizes = [16, 256], strides = [1, 1]} : vector<16x290xbf16> to vector<16x256xbf16>
    %cst_32 = arith.constant 0.000000e+00 : f32
    %115 = arith.truncf %cst_32 : f32 to bf16
    %116 = vector.shape_cast %20 : vector<1x256xi1> to vector<1x256xi1>
    %117 = vector.broadcast %116 : vector<1x256xi1> to vector<16x256xi1>
    %118 = vector.broadcast %115 : bf16 to vector<16x256xbf16>
    %119 = arith.select %117, %118, %114 : vector<16x256xi1>, vector<16x256xbf16>
    %120 = tpu.concatenate %86, %87, %93, %99, %100, %106, %112, %113, %119 in 0 : vector<16x256xbf16>, vector<16x256xbf16>, vector<16x256xbf16>, vector<16x256xbf16>, vector<16x256xbf16>, vector<16x256xbf16>, vector<16x256xbf16>, vector<16x256xbf16>, vector<16x256xbf16> -> vector<144x256xbf16>
    %c0_33 = arith.constant 0 : index
    %c0_34 = arith.constant 0 : index
    %121 = vector.load %arg3[%c0_33, %c0_34] : memref<8x144xbf16, #tpu.memory_space<vmem>>, vector<8x144xbf16>
    %cst_35 = arith.constant dense<0.000000e+00> : vector<8x256xf32>
    %122 = tpu.matmul %121, %120, %cst_35 {dimension_numbers = #tpu.dot_dimension_numbers<[1], [0], [0], [1], [0, 0, 1, 1], [], []>} : vector<8x144xbf16>, vector<144x256xbf16>, vector<8x256xf32> -> vector<8x256xf32>
    %c0_36 = arith.constant 0 : index
    %c0_37 = arith.constant 0 : index
    %123 = vector.load %arg6[%c0_36, %c0_37] : memref<8x1xf32, #tpu.memory_space<vmem>>, vector<8x1xf32>
    %124 = vector.broadcast %123 : vector<8x1xf32> to vector<8x256xf32>
    %125 = arith.mulf %122, %124 : vector<8x256xf32>
    %c0_38 = arith.constant 0 : index
    %c0_39 = arith.constant 0 : index
    %126 = vector.load %arg7[%c0_38, %c0_39] : memref<8x1xf32, #tpu.memory_space<vmem>>, vector<8x1xf32>
    %127 = vector.broadcast %126 : vector<8x1xf32> to vector<8x256xf32>
    %128 = arith.addf %125, %127 : vector<8x256xf32>
    %129 = vector.extract_strided_slice %64 {offsets = [16, 0], sizes = [8, 256], strides = [1, 1]} : vector<24x256xf32> to vector<8x256xf32>
    %c0_40 = arith.constant 0 : index
    %c0_41 = arith.constant 0 : index
    %130 = vector.load %arg8[%c0_40, %c0_41] : memref<8x1xf32, #tpu.memory_space<vmem>>, vector<8x1xf32>
    %131 = vector.broadcast %130 : vector<8x1xf32> to vector<8x256xf32>
    %132 = arith.mulf %129, %131 : vector<8x256xf32>
    %c0_42 = arith.constant 0 : index
    %c0_43 = arith.constant 0 : index
    %133 = vector.load %arg9[%c0_42, %c0_43] : memref<8x1xf32, #tpu.memory_space<vmem>>, vector<8x1xf32>
    %134 = vector.broadcast %133 : vector<8x1xf32> to vector<8x256xf32>
    %135 = arith.addf %132, %134 : vector<8x256xf32>
    %136 = arith.addf %128, %135 : vector<8x256xf32>
    %cst_44 = arith.constant 0.000000e+00 : f32
    %137 = vector.broadcast %cst_44 : f32 to vector<8x256xf32>
    %138 = arith.maximumf %136, %137 : vector<8x256xf32>
    %c0_45 = arith.constant 0 : index
    %c0_46 = arith.constant 0 : index
    %c0_47 = arith.constant 0 : index
    %139 = vector.load %arg10[%c0_45, %c0_46, %c0_47] : memref<1x8x256xf32, #tpu.memory_space<vmem>>, vector<1x8x256xf32>
    %140 = vector.shape_cast %139 : vector<1x8x256xf32> to vector<8x256xf32>
    %141 = vector.shape_cast %138 : vector<8x256xf32> to vector<1x8x256xf32>
    tpu.vector_store %arg10[%c0_45, %c0_46, %c0_47], %141 {strides = array<i32>} : memref<1x8x256xf32, #tpu.memory_space<vmem>>, vector<1x8x256xf32>,
    return
  }
  func.func @transform_0(%arg0: i32) -> (i32, i32, i32) {
    %c0_i32 = arith.constant 0 : i32
    %c0_i32_0 = arith.constant 0 : i32
    %c0_i32_1 = arith.constant 0 : i32
    return %arg0, %c0_i32, %c0_i32_0 : i32, i32, i32
  }
  func.func @transform_1(%arg0: i32) -> (i32, i32) {
    %c0_i32 = arith.constant 0 : i32
    %c0_i32_0 = arith.constant 0 : i32
    %c0_i32_1 = arith.constant 0 : i32
    return %c0_i32, %c0_i32_0 : i32, i32
  }
  func.func @transform_2(%arg0: i32) -> (i32, i32) {
    %c0_i32 = arith.constant 0 : i32
    %c0_i32_0 = arith.constant 0 : i32
    %c0_i32_1 = arith.constant 0 : i32
    return %c0_i32, %c0_i32_0 : i32, i32
  }
  func.func @transform_3(%arg0: i32) -> (i32, i32) {
    %c0_i32 = arith.constant 0 : i32
    %c0_i32_0 = arith.constant 0 : i32
    %c0_i32_1 = arith.constant 0 : i32
    return %c0_i32, %c0_i32_0 : i32, i32
  }
  func.func @transform_4(%arg0: i32) -> (i32, i32) {
    %c0_i32 = arith.constant 0 : i32
    %c0_i32_0 = arith.constant 0 : i32
    %c0_i32_1 = arith.constant 0 : i32
    return %c0_i32, %c0_i32_0 : i32, i32
  }
  func.func @transform_5(%arg0: i32) -> (i32, i32) {
    %c0_i32 = arith.constant 0 : i32
    %c0_i32_0 = arith.constant 0 : i32
    %c0_i32_1 = arith.constant 0 : i32
    return %c0_i32, %c0_i32_0 : i32, i32
  }
  func.func @transform_6(%arg0: i32) -> (i32, i32) {
    %c0_i32 = arith.constant 0 : i32
    %c0_i32_0 = arith.constant 0 : i32
    %c0_i32_1 = arith.constant 0 : i32
    return %c0_i32, %c0_i32_0 : i32, i32
  }
  func.func @transform_7(%arg0: i32) -> (i32, i32) {
    %c0_i32 = arith.constant 0 : i32
    %c0_i32_0 = arith.constant 0 : i32
    %c0_i32_1 = arith.constant 0 : i32
    return %c0_i32, %c0_i32_0 : i32, i32
  }
  func.func @transform_8(%arg0: i32) -> (i32, i32) {
    %c0_i32 = arith.constant 0 : i32
    %c0_i32_0 = arith.constant 0 : i32
    %c0_i32_1 = arith.constant 0 : i32
    return %c0_i32, %c0_i32_0 : i32, i32
  }
  func.func @transform_9(%arg0: i32) -> (i32, i32, i32) {
    %c0_i32 = arith.constant 0 : i32
    %c0_i32_0 = arith.constant 0 : i32
    %c0_i32_1 = arith.constant 0 : i32
    return %arg0, %c0_i32, %c0_i32_0 : i32, i32, i32
  }
}

</mosaic_0001>

<bundles_post_ra>
// kernel: _lambda_.1
= control target key start
LH: loop header
LB: loop body
LE: loop exit
PB: predicated region body
PF: predicated region fallthrough
CT: control target
= control target key end

     0   :  { %s1278_s30 = smov 0   ;;  %s1653_s0 = inlined_call_operand.vmem [shape: bf16[2,16,290], index: 0, kind: input, shape index: {}]   ;;  %s1654_s1 = inlined_call_operand.vmem [shape: bf16[24,144], index: 1, kind: input, shape index: {}]   ;;  %s1655_s2 = inlined_call_operand.vmem [shape: bf16[8,144], index: 2, kind: input, shape index: {}]   ;;  %s1656_s3 = inlined_call_operand.vmem [shape: f32[16,1], index: 3, kind: input, shape index: {}]   ;;  %s1657_s4 = inlined_call_operand.vmem [shape: f32[16,1], index: 4, kind: input, shape index: {}]   ;;  %s1658_s5 = inlined_call_operand.vmem [shape: f32[8,1], index: 5, kind: input, shape index: {}]   ;;  %s1659_s6 = inlined_call_operand.vmem [shape: f32[8,1], index: 6, kind: input, shape index: {}]   ;;  %s1660_s7 = inlined_call_operand.vmem [shape: f32[8,1], index: 7, kind: input, shape index: {}]   ;;  %s1661_s8 = inlined_call_operand.vmem [shape: f32[8,1], index: 8, kind: input, shape index: {}]   ;;  %s1662_s9 = inlined_call_operand.vmem [shape: f32[2,8,256], index: 9, kind: output, shape index: {}]  }
   0x1 LB: > { %s1102_s10 = sadd.s32 4294967295, %s1211_s30   ;;  %p1106_p0 = scmp.ge.s32.totalorder %s1211_s30, 1  ;;  %s1211_s30 = sphi %s1278_s30, %s19_s30  }
   0x2   : > { %p287_p1 = scmp.lt.s32.totalorder %s1211_s30, 3 }
   0x4   : > { %p288_p2 = pnand %p1106_p0, %p287_p1 }
   0x5   : > { %p323_p3 = scmp.lt.s32.totalorder (!%p288_p2), %s1102_s10, 1  ;;  %s1214_s15 = smov (!%p288_p2), 16  }
   0x6   : > { %291 = sbr.rel (%p288_p2) target bundleno = 1008 (0x3f0), region = 56  ;;  %s1215_s16 = smov (!%p288_p2), 32  }
   0x7   : > { %s1216_s17 = smov (!%p288_p2), 2   ;;  %s1217_s18 = smov (!%p288_p2), 18  }
   0x8   : > { %s1218_s19 = smov (!%p288_p2), 34   ;;  %s1219_s20 = smov (!%p288_p2), 95  }
   0x9   : > { %s1220_s21 = smov (!%p288_p2), 111   ;;  %s1221_s22 = smov (!%p288_p2), 96  }
   0xa   : > { %s1222_s23 = smov (!%p288_p2), 110   ;;  %s1223_s24 = smov (!%p288_p2), 126  }
   0xb   : > { %v336_v0 = vlaneseq  ;;  %v1213_v1 = vmov 0   ;;  %s1702_s10 = smov (!%p323_p3, %s1102_s10), 1  ;;  %vm421_vm6 = vcmask 261120   ;;  %vm410_vm8 = vcmask 146432   ;;  %s1224_s25 = smov 112  }
   0xc   : > { %1190 = vset.pattern.permute.xlu1 %v1213_v1  ;;  %1191 = vset.pattern.permute.xlu0 %v1213_v1  ;;  %s1166_s11 = smul.u32 24, %s1702_s10  ;;  %vm1671_vm12 = vcmask 130048   ;;  %vm1663_vm14 = vcmask 777216   ;;  %s1225_s26 = smov 127  }
   0xd   : > { %v337_v2 = vand.u32 127, %v336_v0  ;;  %s1226_s29 = smov 94   ;;  %s1227_s12 = smov 17  }
   0xe   : > { %s327_s14 = scalar_lea.vmem %s1653_s0, %s1166_s11 }
   0xf   : > { %v338_v3 = vadd.s32 128, %v337_v2  ;;  %v343_v4 = vand.u32 15, %v337_v2  ;;  %v1302_v9 = vld [vmem:[%s327_s14] sm:$0xff]  ;;  %v1304_v10 = vld [vmem:[%s327_s14 + $0xc] sm:$0xff]  ;;  %v1310_v12 = vld [vmem:[%s327_s14 + $0x8] sm:$0xf] }
  0x10   : > { %v1308_v11 = vcombine.high %v1302_v9, %v1304_v10  ;;  %v1312_v13 = vld [vmem:[%s327_s14 + $0x14] sm:$0xf]  ;;  %v1322_v15 = vcombine.low %v1302_v9, %v1304_v10 }
  0x11   : > { %v350_v5 = vand.u32 15, %v338_v3  ;;  %vm363_vm0 = vcmp.eq.s32.totalorder %v343_v4, 0  ;;  %vm365_vm1 = vcmp.eq.s32.totalorder %v343_v4, 15  ;;  %v1318_v14 = vcombine.low %v1310_v12, %v1312_v13 }
  0x13   : > { %vm364_vm2 = vcmp.eq.s32.totalorder %v350_v5, 0  ;;  %vm366_vm3 = vcmp.eq.s32.totalorder %v350_v5, 15 }
  0x14   : > { %vm1291_vm4 = vmpackc.low %vm364_vm2, %vm363_vm0  ;;  %vm387_vm0 = vcmask 15360  }
  0x15   : > { %v395_v7 = vsel %vm1291_vm4, 65537, %v1213_v1  ;;  %vm382_vm5 = vmpackc.low %vm366_vm3, %vm365_vm1  ;;  %vm432_vm3 = vcmask 277504  }
  0x16   : > { %396 = vrot.lane.b32.xlu1 %v395_v7, %s1214_s15  ;;  %418 = vrot.lane.b32.xlu0 %v395_v7, %s1215_s16  ;;  %v383_v8 = vsel %vm382_vm5, 65537, %v1213_v1  ;;  %s1163_s15 = sshll.u32 %s1702_s10, 4 }
  0x1a   : > { %384 = vrot.lane.b32.xlu1 %v383_v8, %s1216_s17  ;;  %407 = vrot.lane.b32.xlu0 %v383_v8, %s1217_s18  ;;  %s332_s18 = scalar_lea.vmem %s1662_s9, %s1163_s15 }
  0x1e   : > { %429 = vrot.lane.b32.xlu0 %v383_v8, %s1218_s19  ;;  %583 = vrot.lane.b32.xlu1 %v1308_v11, %s1219_s20 }
  0x22   : > { %585 = vrot.lane.b32.xlu0 %v1318_v14, %s1219_s20  ;;  %581 = vrot.lane.b32.xlu1 %v1322_v15, %s1219_s20 }
  0x26   : > { %526 = vrot.lane.b32.xlu1 %v1318_v14, %s1220_s21  ;;  %524 = vrot.lane.b32.xlu0 %v1308_v11, %s1220_s21 }
  0x88   : > { %v397_v16 = vpop.permute.xlu1 %396  ;;  %v419_v17 = vpop.permute.xlu0 %418 }
  0x89   : > { %v420_v18 = vrot.slane %v419_v17, 4  ;;  %v398_v35 = vrot.slane %v397_v16, 4 }
  0x8b   : > { %vm1332_vm7 = vcmp.ne.s16.totalorder %v420_v18, 0  ;;  %v1336_v20 = vsel %vm421_vm6, %v420_v18, %v419_v17  ;;  %v1384_v46 = vsel %vm1671_vm12, %v398_v35, %v397_v16  ;;  %vm1391_vm1 = vcmp.ne.s16.totalorder %v398_v35, 0 }
  0x8c   : > { %v385_v21 = vpop.permute.xlu1 %384  ;;  %v408_v22 = vpop.permute.xlu0 %407  ;;  %v426_v23 = vsel %vm1332_vm7, 0, %v1310_v12  ;;  %v428_v24 = vsel %vm1332_vm7, 0, %v1312_v13  ;;  %vm423_vm9 = vcmp.ne.s16.totalorder %v1336_v20, 0  ;;  %vm401_vm15 = vcmp.ne.s16.totalorder %v1384_v46, 0  ;;  %v1587_v46 = vld [vmem:[%s1655_s2] sm:$0xff] }
  0x8d   : > { %v386_v25 = vrot.slane %v385_v21, 4  ;;  %v409_v26 = vrot.slane %v408_v22, 4  ;;  %v1126_v27 = vcombine.low %v426_v23, %v428_v24  ;;  %v425_v40 = vsel %vm423_vm9, 0, %v1302_v9 }
  0x8e   : > { %v427_v41 = vsel %vm423_vm9, 0, %v1304_v10  ;;  %v403_v54 = vsel %vm401_vm15, 0, %v1302_v9  ;;  %v405_v55 = vsel %vm401_vm15, 0, %v1304_v10  ;;  %v404_v58 = vsel %vm1391_vm1, 0, %v1310_v12 }
  0x8f   : > { %vm1345_vm10 = vcmp.ne.s16.totalorder %v386_v25, 0  ;;  %v1349_v29 = vsel %vm410_vm8, %v409_v26, %v408_v22  ;;  %vm1351_vm11 = vcmp.ne.s16.totalorder %v409_v26, 0  ;;  %574 = vrot.lane.b32.xlu1 %v1126_v27, %s1221_s22  ;;  %v1125_v47 = vcombine.high %v425_v40, %v427_v41  ;;  %v709_v22 = vld [vmem:[%s1657_s4 + $0x8] sm:$0xff] }
  0x90   : > { %vm412_vm13 = vcmp.ne.s16.totalorder %v1349_v29, 0  ;;  %v415_v31 = vsel %vm1351_vm11, 0, %v1310_v12  ;;  %v417_v32 = vsel %vm1351_vm11, 0, %v1312_v13  ;;  %v430_v33 = vpop.permute.xlu0 %429  ;;  %v584_v34 = vpop.permute.xlu1 %583  ;;  %v392_v37 = vsel %vm1345_vm10, 0, %v1310_v12 }
  0x91   : > { %v1123_v36 = vcombine.low %v415_v31, %v417_v32  ;;  %v394_v38 = vsel %vm1345_vm10, 0, %v1312_v13  ;;  %v414_v42 = vsel %vm412_vm13, 0, %v1302_v9  ;;  %v416_v43 = vsel %vm412_vm13, 0, %v1304_v10 }
  0x92   : > { %v1117_v39 = vcombine.low %v392_v37, %v394_v38  ;;  %v1122_v49 = vcombine.high %v414_v42, %v416_v43  ;;  %v1124_v51 = vcombine.low %v425_v40, %v427_v41  ;;  %v1121_v52 = vcombine.low %v414_v42, %v416_v43 }
  0x93   : > { %550 = vrot.lane.b32.xlu0 %v1123_v36, %s1222_s23  ;;  %v1402_v56 = vsel %vm387_vm0, %v386_v25, %v385_v21  ;;  %v1119_v57 = vcombine.high %v403_v54, %v405_v55  ;;  %v406_v59 = vsel %vm1391_vm1, 0, %v1312_v13  ;;  %v1118_v61 = vcombine.low %v403_v54, %v405_v55  ;;  %v708_v21 = vld [vmem:[%s1657_s4] sm:$0xff] }
  0x94   : > { %491 = vrot.lane.b32.xlu1 %v1117_v39, %s1223_s24  ;;  %v586_v44 = vpop.permute.xlu0 %585  ;;  %v582_v45 = vpop.permute.xlu1 %581  ;;  %vm389_vm2 = vcmp.ne.s16.totalorder %v1402_v56, 0  ;;  %v1120_v60 = vcombine.low %v404_v58, %v406_v59  ;;  %v431_v0 = vrot.slane %v430_v33, 4  ;;  %vm1664_vm8 = vcmask 785408  }
  0x95   : > { %v589_v48 = vsel %vm1663_vm14, %v584_v34, %v586_v44  ;;  %v588_v50 = vsel %vm1663_vm14, %v582_v45, %v584_v34  ;;  %v391_v62 = vsel %vm389_vm2, 0, %v1302_v9  ;;  %v393_v63 = vsel %vm389_vm2, 0, %v1304_v10 }
  0x96   : > { %641 = vmatprep.subr.bf16.mxu0 %v589_v48  ;;  %v1116_v2 = vcombine.high %v391_v62, %v393_v63  ;;  %v1423_v3 = vsel %vm432_vm3, %v431_v0, %v430_v33  ;;  %vm1425_vm5 = vcmp.ne.s16.totalorder %v431_v0, 0  ;;  %v1115_v5 = vcombine.low %v391_v62, %v393_v63 }
  0x97   : > { %572 = vrot.lane.b32.xlu0 %v1125_v47, %s1221_s22  ;;  %642 = vmatpush1.bf16.msra.mxu0 %v588_v50  ;;  %vm434_vm6 = vcmp.ne.s16.totalorder %v1423_v3, 0  ;;  %v437_v7 = vsel %vm1425_vm5, 0, %v1310_v12  ;;  %v439_v8 = vsel %vm1425_vm5, 0, %v1312_v13  ;;  %v1197_v12 = vld [vmem:[%s1654_s1 + $0x4] ss:$8 sps:$4 sm:$0xff]   ;;  %vm1670_vm0 = vcmask 900096  }
  0x98   : > { %548 = vrot.lane.b32.xlu1 %v1122_v49, %s1222_s23  ;;  %v1129_v16 = vcombine.low %v437_v7, %v439_v8  ;;  %v438_v17 = vsel %vm434_vm6, 0, %v1304_v10  ;;  %1134 = vmatprep.mubr.msk.bf16.mxu0 %vm1671_vm12, %v1197_v12  ;;  %v527_v23 = vpop.permute.xlu1 %526  ;;  %v525_v24 = vpop.permute.xlu0 %524  ;;  %vm1665_vm3 = vcmask 908288   ;;  %vm1668_vm14 = vcmask 916480   ;;  %v618_v7 = vld [vmem:[%s1654_s1 + $0x10] sm:$0xff] }
  0x99   : > { %v530_v41 = vsel %vm1665_vm3, %v525_v24, %v527_v23  ;;  %v376_v54 = vsel %vm1291_vm4, 0, %v1302_v9  ;;  %v377_v55 = vsel %vm1291_vm4, 0, %v1304_v10  ;;  %v1133_v8 = vcombine.high %v618_v7, %v618_v7 }
  0x9a   : > { %v1111_v59 = vcombine.high %v376_v54, %v377_v55  ;;  %v1110_v62 = vcombine.low %v376_v54, %v377_v55 }
  0x9b   : > { %570 = vrot.lane.b32.xlu0 %v1124_v51, %s1221_s22 }
  0x9c   : > { %546 = vrot.lane.b32.xlu1 %v1121_v52, %s1222_s23 }
  0x9f   : > { %522 = vrot.lane.b32.xlu0 %v1322_v15, %s1220_s21 }
  0xa0   : > { %513 = vrot.lane.b32.xlu1 %v1119_v57, %s1224_s25 }
  0xa3   : > { %515 = vrot.lane.b32.xlu0 %v1120_v60, %s1224_s25 }
  0xa4   : > { %511 = vrot.lane.b32.xlu1 %v1118_v61, %s1224_s25 }
  0xa7   : > { %489 = vrot.lane.b32.xlu0 %v1116_v2, %s1223_s24 }
  0xa8   : > { %465 = vrot.lane.b32.xlu1 %v1308_v11, %s1225_s26  ;;  %v436_v11 = vsel %vm434_vm6, 0, %v1302_v9 }
  0xa9   : > { %v1128_v13 = vcombine.high %v436_v11, %v438_v17  ;;  %v1127_v18 = vcombine.low %v436_v11, %v438_v17 }
  0xab   : > { %487 = vrot.lane.b32.xlu0 %v1115_v5, %s1223_s24  ;;  %v1195_v5 = vld [vmem:[%s1654_s1] ss:$8 sps:$4 sm:$0xff]  }
  0xac   : > { %463 = vrot.lane.b32.xlu1 %v1322_v15, %s1225_s26  ;;  %v692_v15 = vld [vmem:[%s1656_s3] sm:$0xff] }
  0xaf   : > { %467 = vrot.lane.b32.xlu0 %v1318_v14, %s1225_s26  ;;  %v693_v14 = vld [vmem:[%s1656_s3 + $0x8] sm:$0xff] }
  0xb0   : > { %609 = vrot.lane.b32.xlu1 %v1129_v16, %s1226_s29  ;;  %v1132_v16 = vcombine.low %v618_v7, %v618_v7 }
  0xb3   : > { %607 = vrot.lane.b32.xlu0 %v1128_v13, %s1226_s29 }
  0xb4   : > { %696 = vperm.xlu1 %1190, %v692_v15  }
  0xb7   : > { %605 = vrot.lane.b32.xlu0 %v1127_v18, %s1226_s29 }
  0xb8   : > { %712 = vperm.xlu1 %1190, %v708_v21  }
  0xbb   : > { %701 = vperm.xlu0 %1191, %v693_v14  }
  0xbc   : > { %717 = vperm.xlu1 %1190, %v709_v22  }
 0x101   : > { %v575_v25 = vpop.permute.xlu1 %574 }
 0x105   : > { %v551_v26 = vpop.permute.xlu0 %550 }
 0x106   : > { %v492_v27 = vpop.permute.xlu1 %491 }
 0x109   : > { %v573_v31 = vpop.permute.xlu0 %572 }
 0x10a   : > { %v549_v32 = vpop.permute.xlu1 %548  ;;  %v578_v33 = vsel %vm1664_vm8, %v573_v31, %v575_v25 }
 0x10b   : > { %643 = vmatprep.subr.bf16.mxu0 %v578_v33  ;;  %v554_v37 = vsel %vm1670_vm0, %v549_v32, %v551_v26 }
 0x10d   : > { %v571_v34 = vpop.permute.xlu0 %570 }
 0x10e   : > { %v547_v35 = vpop.permute.xlu1 %546  ;;  %v577_v36 = vsel %vm1664_vm8, %v571_v34, %v573_v31  ;;  %vm1666_vm8 = vcmask 1031168  }
 0x10f   : > { %644 = vmatpush1.bf16.msra.mxu0 %v577_v36  ;;  %v553_v40 = vsel %vm1670_vm0, %v547_v35, %v549_v32  ;;  %vm750_vm0 = vcmask 138240  }
 0x110   : > { %645 = vmatprep.subr.bf16.mxu0 %v554_v37 }
 0x111   : > { %v523_v38 = vpop.permute.xlu0 %522 }
 0x112   : > { %v514_v39 = vpop.permute.xlu1 %513  ;;  %v529_v44 = vsel %vm1665_vm3, %v523_v38, %v525_v24  ;;  %vm1667_vm3 = vcmask 1039360  }
 0x113   : > { %646 = vmatpush1.bf16.msra.mxu0 %v553_v40 }
 0x114   : > { %647 = vmatprep.subr.bf16.mxu0 %v530_v41 }
 0x115   : > { %v516_v42 = vpop.permute.xlu0 %515 }
 0x116   : > { %v512_v43 = vpop.permute.xlu1 %511  ;;  %v519_v45 = vsel %vm1668_vm14, %v514_v39, %v516_v42 }
 0x117   : > { %648 = vmatpush1.bf16.msra.mxu0 %v529_v44  ;;  %v518_v49 = vsel %vm1668_vm14, %v512_v43, %v514_v39  ;;  %vm731_vm14 = vcmask 273544  }
 0x118   : > { %649 = vmatprep.subr.bf16.mxu0 %v519_v45  ;;  %732 = vst.msk [vmem:[#allocation2 + $0x8] sm:$0xf] %vm731_vm14, %v1213_v1  ;;  %733 = vst.msk [vmem:[#allocation2 + $0x14] sm:$0xf] %vm731_vm14, %v1213_v1  ;;  %vm757_vm14 = vcmask 1043592  }
 0x119   : > { %v490_v47 = vpop.permute.xlu0 %489 }
 0x11a   : > { %v466_v48 = vpop.permute.xlu1 %465  ;;  %v495_v50 = vsel %vm1666_vm8, %v490_v47, %v492_v27 }
 0x11b   : > { %650 = vmatpush1.bf16.msra.mxu0 %v518_v49 }
 0x11c   : > { %651 = vmatprep.subr.bf16.mxu0 %v495_v50 }
 0x11d   : > { %v488_v51 = vpop.permute.xlu0 %487 }
 0x11e   : > { %v494_v52 = vsel %vm1666_vm8, %v488_v51, %v490_v47  ;;  %v464_v57 = vpop.permute.xlu1 %463  ;;  %vm1669_vm8 = vcmask 769024  }
 0x11f   : > { %652 = vmatpush1.bf16.msra.mxu0 %v494_v52  ;;  %v470_v61 = vsel %vm1667_vm3, %v464_v57, %v466_v48 }
 0x121   : > { %v468_v58 = vpop.permute.xlu0 %467 }
 0x122   : > { %v471_v60 = vsel %vm1667_vm3, %v466_v48, %v468_v58  ;;  %v610_v63 = vpop.permute.xlu1 %609  ;;  %vm728_vm3 = vcmask 134144  }
 0x123   : > { %653 = vmatprep.subr.bf16.mxu0 %v471_v60  ;;  %729 = vst.msk [vmem:[#allocation2] sm:$0xf] %vm728_vm3, %v1213_v1  ;;  %730 = vst.msk [vmem:[#allocation2 + $0xc] sm:$0xf] %vm728_vm3, %v1213_v1 }
 0x124   : > { %654 = vmatpush1.bf16.msra.mxu0 %v470_v61 }
 0x125   : > { %v608_v0 = vpop.permute.xlu0 %607  ;;  %655 = vmatprep.subr.bf16.mxu0 %v1111_v59 }
 0x126   : > { %v613_v9 = vsel %vm1669_vm8, %v608_v0, %v610_v63 }
 0x128   : > { %656 = vmatpush1.bf16.msra.mxu0 %v1110_v62 }
 0x129   : > { %v606_v10 = vpop.permute.xlu0 %605  ;;  %671 = vmatprep.subr.bf16.mxu0 %v613_v9 }
 0x12a   : > { %v612_v2 = vsel %vm1669_vm8, %v606_v10, %v608_v0  ;;  %vm758_vm8 = vcmask 1047556  }
 0x12c   : > { %672 = vmatpush2.bf16.msra.mxu0 %v612_v2 }
 0x12f   : > { %674 = vmatmul.mubr.bf16.vlgmr.msra.gmra.mxu0 %v1195_v5  ;;  %v697_v11 = vpop.permute.xlu1 %696 }
 0x130   : > { %1135 = vmatprep.mubr.msk.bf16.mxu0 %vm1671_vm12, %v1133_v8  ;;  %vm759_vm12 = vmor %vm758_vm8, %vm757_vm14  ;;  %vm1699_vm14 = vcmask 769024  }
 0x133   : > { %v713_v17 = vpop.permute.xlu1 %712 }
 0x136   : > { %v702_v18 = vpop.permute.xlu0 %701 }
 0x137   : > { %684 = vmatmul.mubr.bf16.gmra.mxu0 %v1132_v16  ;;  %v718_v25 = vpop.permute.xlu1 %717 }
 0x1ef   : > { %v675_v12 = vpop.f32.mrf.mxu0 }
 0x1f0   : > { %v704_v13 = vmul.f32 %v697_v11, %v675_v12 }
 0x1f1   : > { %v677_v15 = vpop.f32.mrf.mxu0 }
 0x1f2   : > { %v720_v21 = vadd.f32 %v713_v17, %v704_v13  ;;  %v705_v14 = vmul.f32 %v697_v11, %v677_v15 }
 0x1f3   : > { %v679_v22 = vpop.f32.mrf.mxu0 }
 0x1f4   : > { %v721_v23 = vadd.f32 %v713_v17, %v705_v14  ;;  %v706_v24 = vmul.f32 %v702_v18, %v679_v22  ;;  %v724_v27 = vmax.f32 %v720_v21, 0.0  ;;  %v1159_v22 = vcombine.high %v1587_v46, %v1587_v46 }
 0x1f5   : > { %v681_v26 = vpop.f32.mrf.mxu0 }
 0x1f6   : > { %v725_v31 = vmax.f32 %v721_v23, 0.0  ;;  %v722_v32 = vadd.f32 %v718_v25, %v706_v24  ;;  %v707_v1 = vmul.f32 %v702_v18, %v681_v26 }
 0x1f8   : > { %v723_v33 = vadd.f32 %v718_v25, %v707_v1  ;;  %v1164_v34 = vpack.c.bf16 %v725_v31, %v724_v27  ;;  %v726_v35 = vmax.f32 %v722_v32, 0.0  ;;  %v1599_v25 = vpop.f32.mrf.mxu0  ;;  %v1009_v32 = vld [vmem:[%s1658_s5] sm:$0xff] }
 0x1f9   : > { %v1025_v1 = vld [vmem:[%s1660_s7] sm:$0xff] }
 0x1fa   : > { %v727_v36 = vmax.f32 %v723_v33, 0.0  ;;  %744 = vrot.lane.b32.xlu0 %v1164_v34, %s1227_s12  ;;  %v1606_v31 = vpop.f32.mrf.mxu0  ;;  %v1017_v34 = vld [vmem:[%s1659_s6] sm:$0xff] }
 0x1fc   : > { %v1165_v37 = vpack.c.bf16 %v727_v36, %v726_v35  ;;  %v689_v33 = vpop.f32.mrf.mxu0  ;;  %v1033_v35 = vld [vmem:[%s1661_s8] sm:$0xff] }
 0x1fe   : > { %746 = vrot.lane.b32.xlu1 %v1165_v37, %s1227_s12  ;;  %v690_v4 = vpop.f32.mrf.mxu0 }
 0x26c   : > { %v745_v38 = vpop.permute.xlu0 %744 }
 0x26d   : > { %v748_v39 = vrot.slane %v745_v38, 4 }
 0x26f   : > { %v751_v40 = vsel %vm750_vm0, %v748_v39, %v745_v38  ;;  %761 = vst.msk [vmem:[#allocation2 + $0x8] sm:$0xf] %vm728_vm3, %v748_v39 }
 0x270   : > { %760 = vst.msk [vmem:[#allocation2] sm:$0xff] %vm759_vm12, %v751_v40  ;;  %v747_v41 = vpop.permute.xlu1 %746 }
 0x271   : > { %v749_v42 = vrot.slane %v747_v41, 4 }
 0x273   : > { %v752_v43 = vsel %vm750_vm0, %v749_v42, %v747_v41  ;;  %763 = vst.msk [vmem:[#allocation2 + $0x14] sm:$0xf] %vm728_vm3, %v749_v42  ;;  %vm1697_vm0 = vcmask 1039360  }
 0x274   : > { %762 = vst.msk [vmem:[#allocation2 + $0xc] sm:$0xff] %vm759_vm12, %v752_v43  ;;  %vm1689_vm12 = vcmask 900096   ;;  %vm1698_vm3 = vmmov %vm1697_vm0 }
 0x276   : > { %v1504_v44 = vld [vmem:[#allocation2 + $0x8] sm:$0xf] }
 0x277   : > { %v779_v50 = vsel %vm1351_vm11, 0, %v1504_v44  ;;  %v764_v51 = vld [vmem:[#allocation2] sm:$0xff]  ;;  %v783_v6 = vsel %vm1332_vm7, 0, %v1504_v44  ;;  %v771_v10 = vsel %vm1345_vm10, 0, %v1504_v44  ;;  %v775_v28 = vsel %vm1391_vm1, 0, %v1504_v44 }
 0x278   : > { %v1522_v55 = vsel %vm1291_vm4, 0, %v764_v51  ;;  %v782_v62 = vsel %vm423_vm9, 0, %v764_v51  ;;  %v778_v5 = vsel %vm412_vm13, 0, %v764_v51  ;;  %v774_v12 = vsel %vm401_vm15, 0, %v764_v51 }
 0x279   : > { %v770_v13 = vsel %vm389_vm2, 0, %v764_v51  ;;  %v786_v56 = vsel %vm434_vm6, 0, %v764_v51  ;;  %v787_v3 = vsel %vm1425_vm5, 0, %v1504_v44 }
 0x27a   : > { %v1506_v45 = vld [vmem:[#allocation2 + $0x14] sm:$0xf] }
 0x27b   : > { %v1142_v47 = vcombine.low %v1504_v44, %v1506_v45  ;;  %v781_v48 = vsel %vm1351_vm11, 0, %v1506_v45  ;;  %v766_v49 = vld [vmem:[#allocation2 + $0xc] sm:$0xff]  ;;  %v785_v60 = vsel %vm1332_vm7, 0, %v1506_v45  ;;  %v773_v9 = vsel %vm1345_vm10, 0, %v1506_v45 }
 0x27c   : > { %v1151_v52 = vcombine.low %v779_v50, %v781_v48  ;;  %v1141_v54 = vcombine.high %v764_v51, %v766_v49  ;;  %v1526_v57 = vsel %vm1291_vm4, 0, %v766_v49  ;;  %v1140_v59 = vcombine.low %v764_v51, %v766_v49 }
 0x27d   : > { %873 = vrot.lane.b32.xlu0 %v1142_v47, %s1220_s21  ;;  %929 = vrot.lane.b32.xlu1 %v1142_v47, %s1219_s20  ;;  %v1139_v58 = vcombine.high %v1522_v55, %v1526_v57  ;;  %v1138_v30 = vcombine.low %v1522_v55, %v1526_v57  ;;  %v784_v61 = vsel %vm423_vm9, 0, %v766_v49  ;;  %v1154_v63 = vcombine.low %v783_v6, %v785_v60 }
 0x27e   : > { %v1153_v0 = vcombine.high %v782_v62, %v784_v61  ;;  %v1145_v2 = vcombine.low %v771_v10, %v773_v9  ;;  %v1152_v19 = vcombine.low %v782_v62, %v784_v61  ;;  %v780_v20 = vsel %vm412_vm13, 0, %v766_v49  ;;  %vm1690_vm13 = vmmov %vm1689_vm12 }
 0x27f   : > { %v1150_v7 = vcombine.high %v778_v5, %v780_v20  ;;  %v777_v8 = vsel %vm1391_vm1, 0, %v1506_v45  ;;  %v1149_v11 = vcombine.low %v778_v5, %v780_v20  ;;  %v776_v17 = vsel %vm401_vm15, 0, %v766_v49 }
 0x280   : > { %v1148_v16 = vcombine.low %v775_v28, %v777_v8  ;;  %v772_v29 = vsel %vm389_vm2, 0, %v766_v49  ;;  %v1147_v53 = vcombine.high %v774_v12, %v776_v17  ;;  %v1146_v18 = vcombine.low %v774_v12, %v776_v17 }
 0x281   : > { %896 = vrot.lane.b32.xlu1 %v1151_v52, %s1222_s23  ;;  %927 = vrot.lane.b32.xlu0 %v1141_v54, %s1219_s20  ;;  %v1144_v15 = vcombine.high %v770_v13, %v772_v29  ;;  %v1143_v21 = vcombine.low %v770_v13, %v772_v29  ;;  %v788_v14 = vsel %vm434_vm6, 0, %v766_v49  ;;  %v789_v24 = vsel %vm1425_vm5, 0, %v1506_v45 }
 0x282   : > { %v1156_v23 = vcombine.high %v786_v56, %v788_v14  ;;  %vm1684_vm4 = vcmask 130048   ;;  %v1157_v26 = vcombine.low %v787_v3, %v789_v24  ;;  %v1155_v27 = vcombine.low %v786_v56, %v788_v14 }
 0x283   : > { %1160 = vmatprep.mubr.msk.bf16.mxu1 %vm1684_vm4, %v1159_v22  ;;  %vm1685_vm7 = vcmask 777216   ;;  %vm1687_vm10 = vcmask 785408   ;;  %vm1691_vm15 = vcmask 908288   ;;  %vm1693_vm2 = vcmask 916480   ;;  %vm1700_vm4 = vmmov %vm1699_vm14 }
 0x284   : > { %vm1686_vm9 = vmmov %vm1685_vm7  ;;  %vm1695_vm6 = vcmask 1031168  }
 0x285   : > { %871 = vrot.lane.b32.xlu1 %v1141_v54, %s1220_s21  ;;  %925 = vrot.lane.b32.xlu0 %v1140_v59, %s1219_s20  ;;  %vm1688_vm11 = vmmov %vm1687_vm10 }
 0x286   : > { %vm1692_vm1 = vmmov %vm1691_vm15 }
 0x287   : > { %vm1694_vm5 = vmmov %vm1693_vm2 }
 0x288   : > { %vm1696_vm8 = vmmov %vm1695_vm6 }
 0x289   : > { %919 = vrot.lane.b32.xlu0 %v1154_v63, %s1221_s22  ;;  %917 = vrot.lane.b32.xlu1 %v1153_v0, %s1221_s22 }
 0x28d   : > { %840 = vrot.lane.b32.xlu0 %v1145_v2, %s1223_s24  ;;  %915 = vrot.lane.b32.xlu1 %v1152_v19, %s1221_s22 }
 0x291   : > { %869 = vrot.lane.b32.xlu1 %v1140_v59, %s1220_s21  ;;  %894 = vrot.lane.b32.xlu0 %v1150_v7, %s1222_s23 }
 0x295   : > { %863 = vrot.lane.b32.xlu1 %v1148_v16, %s1224_s25  ;;  %892 = vrot.lane.b32.xlu0 %v1149_v11, %s1222_s23 }
 0x299   : > { %861 = vrot.lane.b32.xlu0 %v1147_v53, %s1224_s25  ;;  %838 = vrot.lane.b32.xlu1 %v1144_v15, %s1223_s24  ;;  %v1158_v15 = vcombine.low %v1587_v46, %v1587_v46 }
 0x29d   : > { %859 = vrot.lane.b32.xlu0 %v1146_v18, %s1224_s25  ;;  %836 = vrot.lane.b32.xlu1 %v1143_v21, %s1223_s24 }
 0x2a1   : > { %815 = vrot.lane.b32.xlu0 %v1141_v54, %s1225_s26  ;;  %817 = vrot.lane.b32.xlu1 %v1142_v47, %s1225_s26 }
 0x2a5   : > { %813 = vrot.lane.b32.xlu0 %v1140_v59, %s1225_s26  ;;  %950 = vrot.lane.b32.xlu1 %v1156_v23, %s1226_s29 }
 0x2a9   : > { %952 = vrot.lane.b32.xlu0 %v1157_v26, %s1226_s29  ;;  %948 = vrot.lane.b32.xlu1 %v1155_v27, %s1226_s29 }
 0x2ad   : > { %1012 = vperm.xlu0 %1191, %v1009_v32   ;;  %1028 = vperm.xlu1 %1190, %v1025_v1  }
 0x2b1   : > { %1020 = vperm.xlu0 %1191, %v1017_v34   ;;  %1036 = vperm.xlu1 %1190, %v1033_v35  }
 0x2ef   : > { %v874_v36 = vpop.permute.xlu0 %873  ;;  %v930_v37 = vpop.permute.xlu1 %929 }
 0x2f3   : > { %v897_v38 = vpop.permute.xlu1 %896  ;;  %v928_v39 = vpop.permute.xlu0 %927 }
 0x2f4   : > { %v932_v40 = vsel %vm1685_vm7, %v928_v39, %v930_v37 }
 0x2f5   : > { %968 = vmatprep.subr.bf16.mxu1 %v932_v40 }
 0x2f7   : > { %v872_v41 = vpop.permute.xlu1 %871  ;;  %v926_v42 = vpop.permute.xlu0 %925 }
 0x2f8   : > { %v931_v43 = vsel %vm1686_vm9, %v926_v42, %v928_v39  ;;  %v876_v6 = vsel %vm1691_vm15, %v872_v41, %v874_v36 }
 0x2f9   : > { %969 = vmatpush1.bf16.msra.mxu1 %v931_v43 }
 0x2fb   : > { %v920_v44 = vpop.permute.xlu0 %919  ;;  %v918_v45 = vpop.permute.xlu1 %917 }
 0x2fc   : > { %v922_v47 = vsel %vm1687_vm10, %v918_v45, %v920_v44 }
 0x2fd   : > { %970 = vmatprep.subr.bf16.mxu1 %v922_v47 }
 0x2ff   : > { %v841_v48 = vpop.permute.xlu0 %840  ;;  %v916_v49 = vpop.permute.xlu1 %915 }
 0x300   : > { %v921_v50 = vsel %vm1688_vm11, %v916_v49, %v918_v45 }
 0x301   : > { %971 = vmatpush1.bf16.msra.mxu1 %v921_v50 }
 0x303   : > { %v870_v51 = vpop.permute.xlu1 %869  ;;  %v895_v52 = vpop.permute.xlu0 %894 }
 0x304   : > { %v899_v54 = vsel %vm1689_vm12, %v895_v52, %v897_v38  ;;  %v875_v0 = vsel %vm1692_vm1, %v870_v51, %v872_v41 }
 0x305   : > { %972 = vmatprep.subr.bf16.mxu1 %v899_v54 }
 0x307   : > { %v864_v59 = vpop.permute.xlu1 %863  ;;  %v893_v60 = vpop.permute.xlu0 %892 }
 0x308   : > { %v898_v61 = vsel %vm1690_vm13, %v893_v60, %v895_v52 }
 0x309   : > { %973 = vmatpush1.bf16.msra.mxu1 %v898_v61 }
 0x30a   : > { %974 = vmatprep.subr.bf16.mxu1 %v876_v6 }
 0x30b   : > { %v862_v62 = vpop.permute.xlu0 %861  ;;  %v839_v63 = vpop.permute.xlu1 %838 }
 0x30c   : > { %v866_v9 = vsel %vm1693_vm2, %v862_v62, %v864_v59  ;;  %v843_v20 = vsel %vm1695_vm6, %v839_v63, %v841_v48 }
 0x30d   : > { %975 = vmatpush1.bf16.msra.mxu1 %v875_v0 }
 0x30e   : > { %976 = vmatprep.subr.bf16.mxu1 %v866_v9 }
 0x30f   : > { %v860_v10 = vpop.permute.xlu0 %859  ;;  %v837_v2 = vpop.permute.xlu1 %836 }
 0x310   : > { %v865_v19 = vsel %vm1694_vm5, %v860_v10, %v862_v62  ;;  %v842_v8 = vsel %vm1696_vm8, %v837_v2, %v839_v63 }
 0x311   : > { %977 = vmatpush1.bf16.msra.mxu1 %v865_v19 }
 0x312   : > { %978 = vmatprep.subr.bf16.mxu1 %v843_v20 }
 0x313   : > { %v816_v5 = vpop.permute.xlu0 %815  ;;  %v818_v7 = vpop.permute.xlu1 %817 }
 0x314   : > { %v820_v28 = vsel %vm1697_vm0, %v816_v5, %v818_v7 }
 0x315   : > { %979 = vmatpush1.bf16.msra.mxu1 %v842_v8 }
 0x316   : > { %980 = vmatprep.subr.bf16.mxu1 %v820_v28 }
 0x317   : > { %v814_v16 = vpop.permute.xlu0 %813  ;;  %v951_v11 = vpop.permute.xlu1 %950 }
 0x318   : > { %v819_v17 = vsel %vm1698_vm3, %v814_v16, %v816_v5 }
 0x319   : > { %981 = vmatpush1.bf16.msra.mxu1 %v819_v17 }
 0x31a   : > { %982 = vmatprep.subr.bf16.mxu1 %v1139_v58 }
 0x31b   : > { %v953_v29 = vpop.permute.xlu0 %952  ;;  %v949_v13 = vpop.permute.xlu1 %948 }
 0x31c   : > { %v955_v12 = vsel %vm1699_vm14, %v951_v11, %v953_v29  ;;  %v954_v53 = vsel %vm1700_vm4, %v949_v13, %v951_v11 }
 0x31d   : > { %983 = vmatpush1.bf16.msra.mxu1 %v1138_v30 }
 0x31e   : > { %998 = vmatprep.subr.bf16.mxu1 %v955_v12 }
 0x321   : > { %999 = vmatpush2.bf16.msra.mxu1 %v954_v53 }
 0x324   : > { %1001 = vmatmul.mubr.bf16.vlgmr.msra.gmra.mxu1 %v1158_v15 }
 0x328   : > { %v1029_v18 = vpop.permute.xlu1 %1028  ;;  %v1013_v21 = vpop.permute.xlu0 %1012 }
 0x329   : > { %v1031_v56 = vmul.f32 %v1029_v18, %v1599_v25  ;;  %v1032_v55 = vmul.f32 %v1029_v18, %v1606_v31 }
 0x32c   : > { %v1037_v58 = vpop.permute.xlu1 %1036  ;;  %v1021_v23 = vpop.permute.xlu0 %1020 }
 0x32d   : > { %v1039_v57 = vadd.f32 %v1037_v58, %v1031_v56  ;;  %v1040_v27 = vadd.f32 %v1037_v58, %v1032_v55 }
 0x3e4   : > { %v1002_v14 = vpop.f32.mrf.mxu1 }
 0x3e5   : > { %v1015_v22 = vmul.f32 %v1013_v21, %v1002_v14 }
 0x3e6   : > { %v1004_v24 = vpop.f32.mrf.mxu1 }
 0x3e7   : > { %v1023_v30 = vadd.f32 %v1021_v23, %v1015_v22  ;;  %v1016_v3 = vmul.f32 %v1013_v21, %v1004_v24 }
 0x3e8   : > { %v1006_v26 = vpop.f32.mrf.mxu1 }
 0x3e9   : > { %v1041_v46 = vadd.f32 %v1039_v57, %v1023_v30  ;;  %v1024_v32 = vadd.f32 %v1021_v23, %v1016_v3 }
 0x3ea   : > { %v1007_v1 = vpop.f32.mrf.mxu1 }
 0x3eb   : > { %v1043_v33 = vmax.f32 %v1041_v46, 0.0  ;;  %v1042_v25 = vadd.f32 %v1040_v27, %v1024_v32 }
 0x3ed   : > { %1045 = vst [vmem:[%s332_s18] sm:$0xff] %v1043_v33  ;;  %v1044_v4 = vmax.f32 %v1042_v25, 0.0 }
 0x3ef   : > { %1046 = vst [vmem:[%s332_s18 + $0x8] sm:$0xff] %v1044_v4 }
 0x3f0 PF: > { %s19_s30 = sadd.s32 1, %s1211_s30  }
 0x3f1   : > { %p16_p4 = scmp.ge.s32.totalorder %s19_s30, 4  }
 0x3f3   :  { %18 = sbr.rel (!%p16_p4) target bundleno = 1 (0x1), region = 86 }

</bundles_post_ra>
